<compile_context>
chip_gen: v5e
topology: v5e:2x2
jax: 0.10.0
libtpu: 0.0.40
codegen_flags: <defaults>
</compile_context>

<pallas_src>
import functools

import jax
import jax.numpy as jnp
from jax.experimental import pallas as pl
from jax.experimental.pallas import tpu as pltpu

GAMMA = 2.0


def _focal_pow(q, gamma):
    """q**gamma: cheap VPU multiplies when gamma is a small positive integer."""
    g = float(gamma)
    if g.is_integer() and 0 < int(g) <= 8:
        out = q
        for _ in range(int(g) - 1):
            out = out * q
        return out
    # TODO(synk): non-integer gamma falls back to pow (EUP log+exp per element).
    return q ** g


def _focal_loss_kernel(logits_ref, target_ref, out_ref, *, gamma):
    x = logits_ref[...].astype(jnp.float32)         # (TN, C)
    t = target_ref[...]                              # (TN, 1) int32

    # Numerically-stable softmax statistics along the class (lane) axis.
    m = jnp.max(x, axis=-1, keepdims=True)           # (TN, 1)
    shifted = x - m
    s = jnp.sum(jnp.exp(shifted), axis=-1, keepdims=True)
    log_s = jnp.log(s)                                # (TN, 1)

    # Gather the target column via one-hot compare/select (no lane gather on TPU).
    class_ids = jax.lax.broadcasted_iota(jnp.int32, x.shape, 1)
    x_t = jnp.sum(jnp.where(class_ids == t, shifted, 0.0),
                  axis=-1, keepdims=True)             # (TN, 1)

    # Focal term only on the target entry; write per-row values, sum in wrapper.
    log_p_t = x_t - log_s                             # (TN, 1)
    p_t = jnp.exp(log_p_t)
    out_ref[...] = _focal_pow(1.0 - p_t, gamma) * log_p_t


def _choose_row_tile(n, c, itemsize):
    """Row-tile size from a total VMEM block budget (lane padding + 2x buffers)."""
    c_lanes = pl.cdiv(c, 128) * 128                  # VMEM lane padding of logits
    per_row_vmem = 2 * (c_lanes * itemsize           # logits block (double-buffered)
                        + 128 * 4                    # (tn,1) int32 targets, lane-padded
                        + 128 * 4)                   # (tn,1) f32 output, lane-padded
    budget = 40 * 1024 * 1024                        # fits v7x's 64 MiB VMEM w/ headroom
    tn = (budget // per_row_vmem) // 16 * 16
    tn = max(16, int(tn))                            # sublane-friendly minimum
    n_rounded = pl.cdiv(n, 16) * 16
    return min(tn, n_rounded)


def focal_loss(logits, targets, gamma=GAMMA):
    """logits: (N, C) float; targets: (N,) int. Returns scalar float32 loss."""
    n, c = logits.shape
    itemsize = int(jnp.dtype(logits.dtype).itemsize)
    tn = _choose_row_tile(n, c, itemsize)
    grid = (pl.cdiv(n, tn),)

    t2d = targets.astype(jnp.int32).reshape(n, 1)

    cost = pl.CostEstimate(
        flops=int(6 * n * c),
        transcendentals=int(n * (c + 3)),
        bytes_accessed=int(n * c * itemsize + n * 4 + n * 4),
    )

    kernel = functools.partial(_focal_loss_kernel, gamma=gamma)
    per_row = pl.pallas_call(
        kernel,
        out_shape=jax.ShapeDtypeStruct((n, 1), jnp.float32),
        grid=grid,
        in_specs=[
            pl.BlockSpec((tn, c), lambda i: (i, 0)),
            pl.BlockSpec((tn, 1), lambda i: (i, 0)),
        ],
        out_specs=pl.BlockSpec((tn, 1), lambda i: (i, 0)),
        compiler_params=pltpu.CompilerParams(
            dimension_semantics=("parallel",),
            vmem_limit_bytes=48 * 1024 * 1024,
        ),
        cost_estimate=cost,
    )(logits, t2d)

    # reduction='mean' with weight=None: plain mean over the batch.
    return -jnp.sum(per_row) / n


def _focal_loss_ref(logits, targets, gamma=GAMMA):
    log_prob = jax.nn.log_softmax(logits.astype(jnp.float32), axis=-1)
    prob = jnp.exp(log_prob)
    focal = (1.0 - prob) ** gamma * log_prob
    picked = jnp.take_along_axis(
        focal, targets[:, None].astype(jnp.int32), axis=-1)[:, 0]
    return -jnp.mean(picked)


if __name__ == "__main__":
    key = jax.random.PRNGKey(0)
    k1, k2, k3, k4, k5, k6 = jax.random.split(key, 6)

    # Small classification-style shapes: batch=8, classes=32.
    N, C = 8, 32
    logits = jax.random.normal(k1, (N, C), dtype=jnp.float32)
    targets = jax.random.randint(k2, (N,), 0, C, dtype=jnp.int32)

    loss = focal_loss(logits, targets)
    jax.block_until_ready(loss)
    ref = _focal_loss_ref(logits, targets)
    assert jnp.allclose(loss, ref, atol=1e-5, rtol=1e-5), (loss, ref)

    # Ragged batch + non-128-multiple class count exercises the partial row
    # tile and the unpadded (tn, C) class block.
    N2, C2 = 100, 200
    logits2 = jax.random.normal(k3, (N2, C2), dtype=jnp.float32)
    targets2 = jax.random.randint(k4, (N2,), 0, C2, dtype=jnp.int32)

    loss2 = focal_loss(logits2, targets2)
    jax.block_until_ready(loss2)
    ref2 = _focal_loss_ref(logits2, targets2)
    assert jnp.allclose(loss2, ref2, atol=1e-5, rtol=1e-5), (loss2, ref2)

    # bf16 logits path (halves HBM traffic; kernel upcasts per tile).
    N3, C3 = 64, 64
    logits3 = jax.random.normal(k5, (N3, C3), dtype=jnp.bfloat16)
    targets3 = jax.random.randint(k6, (N3,), 0, C3, dtype=jnp.int32)

    loss3 = focal_loss(logits3, targets3)
    jax.block_until_ready(loss3)
    ref3 = _focal_loss_ref(logits3, targets3)
    assert jnp.allclose(loss3, ref3, atol=1e-4, rtol=1e-4), (loss3, ref3)

    print("KERNEL_OK")
</pallas_src>

<mosaic_0001>
module attributes {stable_mosaic.version = 11 : i64} {
  func.func @_focal_loss_kernel(%arg0: i32, %arg1: memref<16x32xf32, #tpu.memory_space<vmem>>, %arg2: memref<16x1xi32, #tpu.memory_space<vmem>>, %arg3: memref<16x1xf32, #tpu.memory_space<vmem>>) attributes {dimension_semantics = [#tpu.dimension_semantics<parallel>], iteration_bounds = array<i64: 1>, scalar_prefetch = 0 : i64, scratch_operands = 0 : i64, tpu.core_type = #tpu.core_type<tc>, window_params = [{transform_indices = @transform_0, window_bounds = array<i64: 16, 32>}, {transform_indices = @transform_1, window_bounds = array<i64: 16, 1>}, {transform_indices = @transform_2, window_bounds = array<i64: 16, 1>}]} {
    %c0 = arith.constant 0 : index
    %c0_0 = arith.constant 0 : index
    %0 = vector.load %arg1[%c0, %c0_0] : memref<16x32xf32, #tpu.memory_space<vmem>>, vector<16x32xf32>
    %c0_1 = arith.constant 0 : index
    %c0_2 = arith.constant 0 : index
    %1 = vector.load %arg2[%c0_1, %c0_2] : memref<16x1xi32, #tpu.memory_space<vmem>>, vector<16x1xi32>
    %cst = arith.constant dense<0xFF800000> : vector<16xf32>
    %2 = vector.multi_reduction <maximumf>, %0, %cst [1] : vector<16x32xf32> to vector<16xf32>
    %3 = vector.shape_cast %2 : vector<16xf32> to vector<16x1xf32>
    %4 = vector.broadcast %3 : vector<16x1xf32> to vector<16x32xf32>
    %5 = arith.subf %0, %4 : vector<16x32xf32>
    %6 = math.exp %5 : vector<16x32xf32>
    %cst_3 = arith.constant dense<0.000000e+00> : vector<16xf32>
    %7 = vector.multi_reduction <add>, %6, %cst_3 [1] : vector<16x32xf32> to vector<16xf32>
    %8 = vector.shape_cast %7 : vector<16xf32> to vector<16x1xf32>
    %9 = math.log %8 : vector<16x1xf32>
    %10 = tpu.iota {dimensions = array<i32: 1>} : vector<16x32xi32>
    %11 = vector.broadcast %1 : vector<16x1xi32> to vector<16x32xi32>
    %12 = arith.cmpi eq, %10, %11 : vector<16x32xi32>
    %cst_4 = arith.constant 0.000000e+00 : f32
    %13 = vector.broadcast %cst_4 : f32 to vector<16x32xf32>
    %14 = arith.select %12, %5, %13 : vector<16x32xi1>, vector<16x32xf32>
    %cst_5 = arith.constant dense<0.000000e+00> : vector<16xf32>
    %15 = vector.multi_reduction <add>, %14, %cst_5 [1] : vector<16x32xf32> to vector<16xf32>
    %16 = vector.shape_cast %15 : vector<16xf32> to vector<16x1xf32>
    %17 = arith.subf %16, %9 : vector<16x1xf32>
    %18 = math.exp %17 : vector<16x1xf32>
    %cst_6 = arith.constant 1.000000e+00 : f32
    %19 = vector.broadcast %cst_6 : f32 to vector<16x1xf32>
    %20 = arith.subf %19, %18 : vector<16x1xf32>
    %21 = arith.mulf %20, %20 : vector<16x1xf32>
    %22 = arith.mulf %21, %17 : vector<16x1xf32>
    %c0_7 = arith.constant 0 : index
    %c0_8 = arith.constant 0 : index
    %23 = vector.load %arg3[%c0_7, %c0_8] : memref<16x1xf32, #tpu.memory_space<vmem>>, vector<16x1xf32>
    tpu.vector_store %arg3[%c0_7, %c0_8], %22 {strides = array<i32>} : memref<16x1xf32, #tpu.memory_space<vmem>>, vector<16x1xf32>,
    return
  }
  func.func @transform_0(%arg0: i32) -> (i32, i32) {
    %c0_i32 = arith.constant 0 : i32
    %c0_i32_0 = arith.constant 0 : i32
    return %arg0, %c0_i32 : i32, i32
  }
  func.func @transform_1(%arg0: i32) -> (i32, i32) {
    %c0_i32 = arith.constant 0 : i32
    %c0_i32_0 = arith.constant 0 : i32
    return %arg0, %c0_i32 : i32, i32
  }
  func.func @transform_2(%arg0: i32) -> (i32, i32) {
    %c0_i32 = arith.constant 0 : i32
    %c0_i32_0 = arith.constant 0 : i32
    return %arg0, %c0_i32 : i32, i32
  }
}

</mosaic_0001>

<bundles_post_ra>
// kernel: tpu_custom_call.1
= control target key start
LH: loop header
LB: loop body
LE: loop exit
PB: predicated region body
PF: predicated region fallthrough
CT: control target
= control target key end

     0   :  { %vm15_vm0 = vcmask 261120   ;;  %v127_v3 = vmov 0   ;;  %v38_v7 = vlaneseq  ;;  %vm68_vm3 = vcmask 7168   ;;  %s164_s0 = inlined_call_operand.vmem [shape: f32[8,32], index: 0, kind: input, shape index: {}]   ;;  %s165_s1 = inlined_call_operand.vmem [shape: s32[8,1], index: 1, kind: input, shape index: {}]   ;;  %s166_s2 = inlined_call_operand.vmem [shape: f32[8,1], index: 2, kind: output, shape index: {}]  }
   0x1   :  { %v11_v0 = vld [vmem:[%s164_s0] sm:$0xff]  ;;  %113 = vset.pattern.permute.xlu1 %v127_v3  ;;  %114 = vset.pattern.permute.xlu0 %v127_v3  ;;  %v12_v4 = vld [vmem:[%s164_s0 + $0x8] sm:$0xff] }
   0x2   :  { %v13_v1 = vld [vmem:[%s165_s1] sm:$0xff]  ;;  %v16_v2 = vsel %vm15_vm0, %v11_v0, -inf  ;;  %v19_v5 = vsel %vm15_vm0, %v12_v4, -inf  ;;  %v14_v6 = vld [vmem:[%s165_s1 + $0x8] sm:$0xff]  ;;  %v39_v8 = vand.u32 127, %v38_v7 }
   0x3   :  { %17 = vmax.xlane.f32.xlu0 %v16_v2  ;;  %41 = vperm.xlu1 %113, %v13_v1  }
   0xb   :  { %20 = vmax.xlane.f32.xlu0 %v19_v5  ;;  %44 = vperm.xlu1 %113, %v14_v6  }
  0x75   :  { %v42_v9 = vpop.permute.xlu1 %41 }
  0x76   :  { %v18_v10 = vpop.xlane.xlu0 %17  ;;  %vm46_vm1 = vcmp.eq.s32.totalorder %v39_v8, %v42_v9 }
  0x77   :  { %v22_v11 = vsub.f32 %v11_v0, %v18_v10 }
  0x79   :  { %v24_v12 = vmul.f32 1.442695, %v22_v11  ;;  %v48_v13 = vsel %vm46_vm1, %v22_v11, 0.0 }
  0x7a   :  { %v50_v14 = vsel %vm15_vm0, %v48_v13, 0.0 }
  0x7b   :  { %115 = vpow2.f32 %v24_v12  ;;  %51 = vadd.xlane.f32.xlu0 %v50_v14 }
  0x7d   :  { %v45_v15 = vpop.permute.xlu1 %44 }
  0x7e   :  { %v21_v16 = vpop.xlane.xlu0 %20  ;;  %vm47_vm2 = vcmp.eq.s32.totalorder %v39_v8, %v45_v15 }
  0x7f   :  { %v23_v17 = vsub.f32 %v12_v4, %v21_v16 }
  0x81   :  { %v116_v18 = vpop.eup %115  ;;  %v26_v19 = vmul.f32 1.442695, %v23_v17  ;;  %v49_v20 = vsel %vm47_vm2, %v23_v17, 0.0 }
  0x82   :  { %v28_v21 = vsel %vm15_vm0, %v116_v18, 0.0  ;;  %v53_v22 = vsel %vm15_vm0, %v49_v20, 0.0 }
  0x83   :  { %117 = vpow2.f32 %v26_v19  ;;  %29 = vadd.xlane.f32.xlu2 %v28_v21  ;;  %54 = vadd.xlane.f32.xlu1 %v53_v22 }
  0x89   :  { %v118_v23 = vpop.eup %117 }
  0x8a   :  { %v31_v24 = vsel %vm15_vm0, %v118_v23, 0.0 }
  0x8b   :  { %32 = vadd.xlane.f32.xlu2 %v31_v24 }
  0xee   :  { %v52_v29 = vpop.xlane.xlu0 %51 }
  0xf6   :  { %v30_v25 = vpop.xlane.xlu2 %29  ;;  %v55_v34 = vpop.xlane.xlu1 %54 }
  0xf7   :  { %119 = vlog2.f32 %v30_v25 }
  0xfd   :  { %v120_v26 = vpop.eup %119 }
  0xfe   :  { %v35_v27 = vmul.f32 0.6931472, %v120_v26  ;;  %v33_v28 = vpop.xlane.xlu2 %32 }
  0xff   :  { %121 = vlog2.f32 %v33_v28 }
 0x100   :  { %v56_v30 = vsub.f32 %v52_v29, %v35_v27 }
 0x102   :  { %v58_v31 = vmul.f32 1.442695, %v56_v30 }
 0x104   :  { %123 = vpow2.f32 %v58_v31 }
 0x105   :  { %v122_v32 = vpop.eup %121 }
 0x106   :  { %v37_v33 = vmul.f32 0.6931472, %v122_v32 }
 0x108   :  { %v57_v35 = vsub.f32 %v55_v34, %v37_v33 }
 0x10a   :  { %v124_v36 = vpop.eup %123  ;;  %v60_v37 = vmul.f32 1.442695, %v57_v35 }
 0x10b   :  { %v62_v38 = vsub.f32 1.0, %v124_v36 }
 0x10c   :  { %125 = vpow2.f32 %v60_v37 }
 0x10d   :  { %v64_v39 = vmul.f32 %v62_v38, %v62_v38 }
 0x10f   :  { %v66_v40 = vmul.f32 %v64_v39, %v56_v30 }
 0x111   :  { %69 = vst.msk [vmem:[#allocation2] sm:$0xff] %vm68_vm3, %v66_v40 }
 0x112   :  { %v126_v41 = vpop.eup %125 }
 0x118   :  { %v101_v42 = vld [vmem:[#allocation2] sm:$0xff] }
 0x119   :  { %102 = vst [vmem:[%s166_s2] sm:$0xff] %v101_v42 }

</bundles_post_ra>
